<compile_context>
chip_gen: v7x
topology: tpu7x:2x2x1
jax: 0.10.0
libtpu: 0.0.40
codegen_flags: <defaults>
</compile_context>

<pallas_src>
import functools

import jax
import jax.numpy as jnp
from jax.experimental import pallas as pl
from jax.experimental.pallas import tpu as pltpu

_LANES = 128
_SUBLANES = 8
_TILE_ROWS = 2048        # 2048 x 128 x 4B = 1 MiB f32 per block
_FUSED_MAX_ROWS = 2048   # whole tensor <= 1 MiB f32 -> single fused kernel
_N_SPLIT = 2             # parallel splits for pass-1 reduction (v7x: 2 TCs)


def _fused_kernel(x_ref, o_ref, *, rmin, rmax):
    """Single-block path: min/max + rescale in one kernel (one HBM read)."""
    x = x_ref[...].astype(jnp.float32)
    xmin = jnp.min(x)
    xmax = jnp.max(x)
    # NOTE: xmax == xmin (constant input) gives inf/nan, matching the naive
    # PyTorch formula.
    scale = (rmax - rmin) / (xmax - xmin)
    bias = rmin - xmin * scale
    o_ref[...] = (x * scale + bias).astype(o_ref.dtype)


def _minmax_kernel(x_ref, min_ref, max_ref):
    """Pass 1: fold each tile into a resident (1, 8, 128) min/max accumulator.

    The reshape keeps the (8,128) vreg tiling, so the axis-0 reduce is pure
    VPU (elementwise across vregs); the XLU cross-lane reduce happens only
    once, outside the kernel, on the tiny partial outputs.
    """
    x = x_ref[...].astype(jnp.float32)
    xm = x.reshape(-1, _SUBLANES, _LANES)
    tile_min = jnp.min(xm, axis=0, keepdims=True)   # (1, 8, 128)
    tile_max = jnp.max(xm, axis=0, keepdims=True)   # (1, 8, 128)

    @pl.when(pl.program_id(1) == 0)
    def _():
        min_ref[...] = tile_min
        max_ref[...] = tile_max

    @pl.when(pl.program_id(1) != 0)
    def _():
        min_ref[...] = jnp.minimum(min_ref[...], tile_min)
        max_ref[...] = jnp.maximum(max_ref[...], tile_max)


def _scale_kernel(x_ref, sb_ref, o_ref):
    """Pass 2: out = x * scale + bias (scale/bias precomputed, via SMEM)."""
    scale = sb_ref[0]
    bias = sb_ref[1]
    o_ref[...] = (x_ref[...].astype(jnp.float32) * scale + bias).astype(o_ref.dtype)


def _pad_rows(flat, rows_multiple):
    """Pad a flat vector so it reshapes to (k*rows_multiple, 128) rows.

    Padding replicates an existing element, so global min/max are unchanged.
    """
    total = flat.shape[0]
    unit = rows_multiple * _LANES
    padded_total = ((total + unit - 1) // unit) * unit
    pad = padded_total - total
    if pad:
        flat = jnp.concatenate([flat, jnp.broadcast_to(flat[0], (pad,))])
    return flat, padded_total // _LANES


def min_max_scaling(x, value_range=(-1.0, 1.0)):
    """Pallas equivalent of min_max_scaling.forward (out-of-place)."""
    rmin = float(min(value_range))
    rmax = float(max(value_range))

    orig_shape = x.shape
    orig_dtype = x.dtype
    total = x.size
    flat = x.reshape(-1)

    # ---- small-tensor fast path: one kernel, x read from HBM once ---------
    if total <= _FUSED_MAX_ROWS * _LANES:
        flat_p, rows_p = _pad_rows(flat, _SUBLANES)
        x2 = flat_p.reshape(rows_p, _LANES)
        out2 = pl.pallas_call(
            functools.partial(_fused_kernel, rmin=rmin, rmax=rmax),
            out_shape=jax.ShapeDtypeStruct((rows_p, _LANES), orig_dtype),
            grid=(1,),
            in_specs=[pl.BlockSpec((rows_p, _LANES), lambda i: (0, 0))],
            out_specs=pl.BlockSpec((rows_p, _LANES), lambda i: (0, 0)),
        )(x2)
        return out2.reshape(-1)[:total].reshape(orig_shape)

    # ---- large path: two passes --------------------------------------------
    tile_rows = _TILE_ROWS
    flat_p, rows_p = _pad_rows(flat, _N_SPLIT * tile_rows)
    x2 = flat_p.reshape(rows_p, _LANES)
    steps = rows_p // (_N_SPLIT * tile_rows)

    # Pass 1: per-split partial (8,128) min/max accumulators.
    pmin, pmax = pl.pallas_call(
        _minmax_kernel,
        out_shape=(
            jax.ShapeDtypeStruct((_N_SPLIT, _SUBLANES, _LANES), jnp.float32),
            jax.ShapeDtypeStruct((_N_SPLIT, _SUBLANES, _LANES), jnp.float32),
        ),
        grid=(_N_SPLIT, steps),
        in_specs=[pl.BlockSpec((tile_rows, _LANES),
                               lambda c, i: (c * steps + i, 0))],
        out_specs=(
            pl.BlockSpec((1, _SUBLANES, _LANES), lambda c, i: (c, 0, 0)),
            pl.BlockSpec((1, _SUBLANES, _LANES), lambda c, i: (c, 0, 0)),
        ),
        compiler_params=pltpu.CompilerParams(
            dimension_semantics=("parallel", "arbitrary")),
    )(x2)

    # Tiny final reduce + scale/bias precompute (2 x 8 x 128 elements, XLA).
    xmin = jnp.min(pmin)
    xmax = jnp.max(pmax)
    scale = (rmax - rmin) / (xmax - xmin)
    bias = rmin - xmin * scale
    sb = jnp.stack([scale, bias]).astype(jnp.float32)   # (2,) -> SMEM

    # Pass 2: elementwise rescale, original dtype in/out.
    out2 = pl.pallas_call(
        _scale_kernel,
        out_shape=jax.ShapeDtypeStruct((rows_p, _LANES), orig_dtype),
        grid=(rows_p // tile_rows,),
        in_specs=[
            pl.BlockSpec((tile_rows, _LANES), lambda i: (i, 0)),
            pl.BlockSpec(memory_space=pltpu.MemorySpace.SMEM),
        ],
        out_specs=pl.BlockSpec((tile_rows, _LANES), lambda i: (i, 0)),
        compiler_params=pltpu.CompilerParams(
            dimension_semantics=("parallel",)),
    )(x2, sb)

    return out2.reshape(-1)[:total].reshape(orig_shape)


if __name__ == "__main__":
    key = jax.random.PRNGKey(0)
    k1, k2, k3 = jax.random.split(key, 3)
    value_range = (-1.0, 1.0)
    rmin, rmax = float(min(value_range)), float(max(value_range))

    def ref_fn(t):
        tf = t.astype(jnp.float32)
        return ((rmax - rmin) * (tf - tf.min()) / (tf.max() - tf.min()) + rmin)

    # Case 1: module-sized NCHW input (small -> fused single-kernel path).
    x_small = jax.random.normal(k1, (2, 4, 16, 16), dtype=jnp.float32) * 3.0 + 1.5
    y_small = jax.block_until_ready(min_max_scaling(x_small, value_range))
    assert y_small.shape == x_small.shape and y_small.dtype == x_small.dtype
    assert jnp.allclose(y_small, ref_fn(x_small), atol=1e-5, rtol=1e-5)

    # Case 2: larger input -> two-pass (parallel reduction + scale) path.
    x_large = jax.random.normal(k2, (8, 8, 128, 128), dtype=jnp.float32) * 2.0 - 0.5
    y_large = jax.block_until_ready(min_max_scaling(x_large, value_range))
    assert y_large.shape == x_large.shape and y_large.dtype == x_large.dtype
    assert jnp.allclose(y_large, ref_fn(x_large), atol=1e-5, rtol=1e-5)

    # Case 3: bf16 input (original dtype kept end-to-end, f32 math in-kernel).
    x_bf16 = (jax.random.normal(k3, (2, 4, 16, 16), dtype=jnp.float32) * 3.0).astype(jnp.bfloat16)
    y_bf16 = jax.block_until_ready(min_max_scaling(x_bf16, value_range))
    assert y_bf16.shape == x_bf16.shape and y_bf16.dtype == x_bf16.dtype
    assert jnp.allclose(y_bf16.astype(jnp.float32), ref_fn(x_bf16), atol=2e-2)

    print("KERNEL_OK")
</pallas_src>

<mosaic_0001>
module attributes {stable_mosaic.version = 11 : i64} {
  func.func @_fused_kernel(%arg0: i32, %arg1: memref<16x128xf32, #tpu.memory_space<vmem>>, %arg2: memref<16x128xf32, #tpu.memory_space<vmem>>) attributes {dimension_semantics = [#tpu.dimension_semantics<arbitrary>], iteration_bounds = array<i64: 1>, scalar_prefetch = 0 : i64, scratch_operands = 0 : i64, tpu.core_type = #tpu.core_type<tc>, window_params = [{pipeline_mode = #tpu.pipeline_mode<synchronous>, transform_indices = @transform_0, window_bounds = array<i64: 16, 128>}, {pipeline_mode = #tpu.pipeline_mode<synchronous>, transform_indices = @transform_1, window_bounds = array<i64: 16, 128>}]} {
    %c0 = arith.constant 0 : index
    %c0_0 = arith.constant 0 : index
    %0 = vector.load %arg1[%c0, %c0_0] : memref<16x128xf32, #tpu.memory_space<vmem>>, vector<16x128xf32>
    %1 = vector.shape_cast %0 : vector<16x128xf32> to vector<1x16x128xf32>
    %cst = arith.constant dense<0x7F800000> : vector<1xf32>
    %2 = vector.multi_reduction <minimumf>, %1, %cst [1, 2] : vector<1x16x128xf32> to vector<1xf32>
    %3 = vector.shape_cast %2 : vector<1xf32> to vector<1x1x1xf32>
    %4 = vector.extract %3[0, 0, 0] : f32 from vector<1x1x1xf32>
    %5 = vector.shape_cast %0 : vector<16x128xf32> to vector<1x16x128xf32>
    %cst_1 = arith.constant dense<0xFF800000> : vector<1xf32>
    %6 = vector.multi_reduction <maximumf>, %5, %cst_1 [1, 2] : vector<1x16x128xf32> to vector<1xf32>
    %7 = vector.shape_cast %6 : vector<1xf32> to vector<1x1x1xf32>
    %8 = vector.extract %7[0, 0, 0] : f32 from vector<1x1x1xf32>
    %9 = arith.subf %8, %4 : f32
    %cst_2 = arith.constant 2.000000e+00 : f32
    %10 = arith.divf %cst_2, %9 : f32
    %11 = arith.mulf %4, %10 : f32
    %cst_3 = arith.constant -1.000000e+00 : f32
    %12 = arith.subf %cst_3, %11 : f32
    %13 = vector.broadcast %10 : f32 to vector<16x128xf32>
    %14 = arith.mulf %0, %13 : vector<16x128xf32>
    %15 = vector.broadcast %12 : f32 to vector<16x128xf32>
    %16 = arith.addf %14, %15 : vector<16x128xf32>
    %c0_4 = arith.constant 0 : index
    %c0_5 = arith.constant 0 : index
    %17 = vector.load %arg2[%c0_4, %c0_5] : memref<16x128xf32, #tpu.memory_space<vmem>>, vector<16x128xf32>
    tpu.vector_store %arg2[%c0_4, %c0_5], %16 {strides = array<i32>} : memref<16x128xf32, #tpu.memory_space<vmem>>, vector<16x128xf32>,
    return
  }
  func.func @transform_0(%arg0: i32) -> (i32, i32) {
    %c0_i32 = arith.constant 0 : i32
    %c0_i32_0 = arith.constant 0 : i32
    %c0_i32_1 = arith.constant 0 : i32
    return %c0_i32, %c0_i32_0 : i32, i32
  }
  func.func @transform_1(%arg0: i32) -> (i32, i32) {
    %c0_i32 = arith.constant 0 : i32
    %c0_i32_0 = arith.constant 0 : i32
    %c0_i32_1 = arith.constant 0 : i32
    return %c0_i32, %c0_i32_0 : i32, i32
  }
}

</mosaic_0001>

<bundles_post_ra>
// kernel: tpu_custom_call.1
= control target key start
LH: loop header
LB: loop body
LE: loop exit
PB: predicated region body
PF: predicated region fallthrough
CT: control target
= control target key end

     0   :  { %6 = vsyncpa [#allocation3], 0  ;;  %s181_s0 = inlined_call_operand.hbm [shape: f32[16,128], index: 0, kind: input, shape index: {}]   ;;  %s182_s1 = inlined_call_operand.hbm [shape: f32[16,128], index: 1, kind: output, shape index: {}]  }
   0x1   :  { %7 = vsyncpa [#allocation4], 0  ;;  %s137_s6 = smov [#allocation2]   ;;  %s89_s10 = scalar_lea.hbm %s181_s0, 256 }
   0x2   :  { %s13_s7 = sshll.u32 %s137_s6, 4  ;;  %p90_p0 = scmp.ne.s32.totalorder %s181_s0, %s89_s10  ;;  %s14_s7 = int_to_ptr.vmem [resolvable:$true] %s13_s7 }
   0x3   :  { %p93_p1 = scmp.lt.u32.totalorder %s89_s10, %s181_s0 }
   0x5   :  { %p95_p2 = pnand %p93_p1, %p90_p0 }
   0x7   :  { %98 = shalt.err (!%p95_p2)
}
   0x8   :  { %s99_s15 = scalar_lea.vmem %s14_s7, 256  ;;  %p104_p4 = scmp.lt.s32.totalorder %s14_s7, %s14_s7 }
   0x9   :  { %p100_p3 = scmp.ne.s32.totalorder %s14_s7, %s99_s15  ;;  %p105_p5 = scmp.lt.s32.totalorder %s99_s15, %s99_s15 }
   0xb   :  { %p106_p6 = por %p105_p5, %p104_p4 }
   0xd   :  { %p107_p7 = pnand %p106_p6, %p100_p3 }
   0xf   :  { %110 = shalt.err (!%p107_p7)
}
  0x10   :  { %s138_s16 = smov 128   ;;  %s139_s17 = smov 8  }
  0x11   :  { %19 = dma.hbm_to_vmem [thread:$0]  %s181_s0, 256, %s14_s7, [#allocation3], %s138_s16, %s138_s16, %s139_s17  }
  0x12   :  { %133 = dma.done.wait [#allocation3], 256  }
  0x13   :  { %134 = vsyncadd [#allocation3], 4294967040  ;;  %v23_v0 = vld [vmem:[#allocation2] sm:$0xff]  ;;  %v24_v1 = vld [vmem:[#allocation2 + $0x8] sm:$0xff]  ;;  %s140_s26 = smov [#allocation5]  }
  0x14   :  { %v25_v2 = vmin.f32 %v23_v0, %v24_v1  ;;  %v35_v3 = vmax.f32 %v23_v0, %v24_v1  ;;  %s65_s27 = sshll.u32 %s140_s26, 4  ;;  %s66_s27 = int_to_ptr.vmem [resolvable:$true] %s65_s27 }
  0x15   :  { %s111_s28 = scalar_lea.vmem %s66_s27, 256  ;;  %p116_p9 = scmp.lt.s32.totalorder %s66_s27, %s66_s27 }
  0x16   :  { %26 = vmin.xlane.f32.xlu0 %v25_v2  ;;  %p112_p8 = scmp.ne.s32.totalorder %s66_s27, %s111_s28  ;;  %p117_p10 = scmp.lt.s32.totalorder %s111_s28, %s111_s28 }
  0x18   :  { %p118_p11 = por %p117_p10, %p116_p9 }
  0x1a   :  { %36 = vmax.xlane.f32.xlu0 %v35_v3  ;;  %p119_p12 = pnand %p118_p11, %p112_p8 }
  0xa3   :  { %v27_v4 = vpop.xlane.xlu0 %26 }
  0xa4   :  { %v28_v5 = vrot.slane %v27_v4, 4 }
  0xa6   :  { %v29_v6 = vmin.f32 %v27_v4, %v28_v5 }
  0xa7   :  { %v37_v7 = vpop.xlane.xlu0 %36 }
  0xa8   :  { %v30_v8 = vrot.slane %v29_v6, 2  ;;  %v38_v9 = vrot.slane %v37_v7, 4 }
  0xaa   :  { %v39_v10 = vmax.f32 %v37_v7, %v38_v9  ;;  %v31_v11 = vmin.f32 %v29_v6, %v30_v8 }
  0xac   :  { %v40_v12 = vrot.slane %v39_v10, 2  ;;  %v32_v13 = vrot.slane %v31_v11, 1 }
  0xae   :  { %v41_v14 = vmax.f32 %v39_v10, %v40_v12  ;;  %v33_v15 = vmin.f32 %v31_v11, %v32_v13 }
  0xb0   :  { %77 = vpush %v33_v15  ;;  %v42_v16 = vrot.slane %v41_v14, 1 }
  0xb2   :  { %v43_v17 = vmax.f32 %v41_v14, %v42_v16 }
  0xb4   :  { %79 = vpush %v43_v17 }
  0xe1   :  { %s78_s0 = spop %77 }
  0xe5   :  { %s80_s20 = spop %79 }
  0xe6   :  { %s45_s21 = ssub.f32 %s80_s20, %s78_s0 }
  0xe8   :  { %v46_v18 = vstv %s45_s21 }
  0xe9   :  { %87 = vrcp.f32 %v46_v18 }
  0xf3   :  { %v88_v19 = vpop.eup %87 }
  0xf4   :  { %81 = vpush %v88_v19 }
 0x125   :  { %s82_s22 = spop %81 }
 0x126   :  { %s49_s23 = smul.f32 2.0, %s82_s22 }
 0x128   :  { %s50_s24 = smul.f32 %s78_s0, %s49_s23  ;;  %v52_v20 = vstv %s49_s23 }
 0x129   :  { %v53_v21 = vmul.f32 %v52_v20, %v23_v0  ;;  %v54_v22 = vmul.f32 %v52_v20, %v24_v1 }
 0x12a   :  { %s51_s25 = ssub.f32 -1.0, %s50_s24 }
 0x12c   :  { %v55_v23 = vstv %s51_s25 }
 0x12d   :  { %v56_v24 = vadd.f32 %v55_v23, %v53_v21  ;;  %v57_v25 = vadd.f32 %v55_v23, %v54_v22 }
 0x12f   :  { %58 = vst [vmem:[#allocation5] sm:$0xff] %v56_v24  ;;  %59 = vst [vmem:[#allocation5 + $0x8] sm:$0xff] %v57_v25 }
 0x130   :  { %122 = shalt.err (!%p119_p12)
}
 0x131   :  { %s123_s2 = scalar_lea.hbm %s182_s1, 256 }
 0x132   :  { %p124_p13 = scmp.ne.s32.totalorder %s182_s1, %s123_s2  ;;  %p127_p0 = scmp.lt.u32.totalorder %s123_s2, %s182_s1 }
 0x134   :  { %p129_p1 = pnand %p127_p0, %p124_p13 }
 0x136   :  { %132 = shalt.err (!%p129_p1)
}
 0x137   :  { %71 = dma.vmem_to_hbm [thread:$0]  %s66_s27, 256, %s182_s1, [#allocation4], %s138_s16, %s138_s16, %s139_s17  }
 0x138   :  { %135 = dma.done.wait [#allocation4], 256  }
 0x139   :  { %136 = vsyncadd [#allocation4], 4294967040 }
 0x13a   :  { %75 = vsyncpa [#allocation3], 1 }
 0x13b   :  { %76 = vsyncpa [#allocation4], 1 }

</bundles_post_ra>
